<compile_context>
chip_gen: v7x
topology: tpu7x:2x2x1
jax: 0.10.0
libtpu: 0.0.40
codegen_flags: <defaults>
</compile_context>

<pallas_src>
import jax
import jax.numpy as jnp
from jax.experimental import pallas as pl
from jax.experimental.pallas import tpu as pltpu


_LANES = 128
_SUBLANES = 8
# ~4 MiB per input buffer.  3 operands x double-buffering = ~24 MiB VMEM.
_TARGET_BYTES_PER_BUFFER = 4 << 20
# Fits v5e (16 MiB default scoped, 128 MiB physical), v6e (32/128) and
# v7x (32 MiB default, 64 MiB physical per TC).
_VMEM_LIMIT_BYTES = 28 << 20


def _shift_kernel(mu_ref, x_ref, xprev_ref, o_ref):
    # mu lives in SMEM via scalar prefetch; one scalar read per grid step.
    mu = mu_ref[0]
    one_minus_mu = 1.0 - mu
    x = x_ref[...].astype(jnp.float32)
    xp = xprev_ref[...].astype(jnp.float32)
    o_ref[...] = (mu * x + one_minus_mu * xp).astype(o_ref.dtype)


def _round_up(a, b):
    return ((a + b - 1) // b) * b


def _choose_tile_rows(rows, itemsize):
    """Tile height (multiple of 8) balancing VMEM, step overhead and megacore."""
    bytes_per_row = _LANES * itemsize
    max_rows = max(_SUBLANES, _TARGET_BYTES_PER_BUFFER // bytes_per_row)
    n_blocks = pl.cdiv(rows, max_rows)
    # Guarantee >=2 (>=4) blocks for mid/large arrays so v7x's two TensorCores
    # both get work (no effect on v5e/v6e: single TC).
    total_bytes = rows * bytes_per_row
    if total_bytes > (1 << 20):
        n_blocks = max(n_blocks, 2)
    if total_bytes > (4 << 20):
        n_blocks = max(n_blocks, 4)
    # Balanced blocks: avoid a nearly-empty masked trailing block.
    tr = _round_up(pl.cdiv(rows, n_blocks), _SUBLANES)
    return min(tr, rows)


def _shift_pallas_2d(mu_arr, xf, xpf):
    """Run the elementwise shift kernel on a 2D (rows, 128) slab."""
    rows, lanes = xf.shape
    itemsize = xf.dtype.itemsize
    tr = _choose_tile_rows(rows, itemsize)
    grid = (pl.cdiv(rows, tr),)
    n = rows * lanes

    return pl.pallas_call(
        _shift_kernel,
        out_shape=jax.ShapeDtypeStruct((rows, lanes), xf.dtype),
        grid_spec=pltpu.PrefetchScalarGridSpec(
            num_scalar_prefetch=1,
            grid=grid,
            in_specs=[
                pl.BlockSpec((tr, lanes), lambda i, mu_ref: (i, 0)),
                pl.BlockSpec((tr, lanes), lambda i, mu_ref: (i, 0)),
            ],
            out_specs=pl.BlockSpec((tr, lanes), lambda i, mu_ref: (i, 0)),
        ),
        compiler_params=pltpu.CompilerParams(
            dimension_semantics=("parallel",),
            vmem_limit_bytes=_VMEM_LIMIT_BYTES,
        ),
        cost_estimate=pl.CostEstimate(
            flops=3 * n, transcendentals=0, bytes_accessed=3 * n * itemsize),
    )(mu_arr, xf, xpf)


def shift_forward(x, x_prev, mu):
    """Pallas equivalent of Shift.forward.

    x, x_prev : arrays of identical shape (layout-agnostic, e.g. NCHW)
    mu        : scalar parameter
    """
    if x_prev is None:
        return x

    orig_shape = x.shape
    n = x.size
    mu_arr = jnp.asarray([mu], dtype=jnp.float32)

    # Pad to a multiple of 8*128 so rows is sublane-aligned and every block is
    # lane-dense.  For an elementwise op the pad+slice cost is negligible, and
    # it avoids the old (1, n) whole-array fallback (VMEM blow-up risk).
    pad_to = _SUBLANES * _LANES
    n_pad = _round_up(n, pad_to)
    xf = x.reshape(-1)
    xpf = x_prev.reshape(-1)
    if n_pad != n:
        pad = n_pad - n
        xf = jnp.pad(xf, (0, pad))
        xpf = jnp.pad(xpf, (0, pad))

    rows = n_pad // _LANES
    out = _shift_pallas_2d(mu_arr,
                           xf.reshape(rows, _LANES),
                           xpf.reshape(rows, _LANES))
    out = out.reshape(-1)
    if n_pad != n:
        out = out[:n]
    return out.reshape(orig_shape)

    # TODO(synk): if the caller's x_prev buffer is known-dead after the call
    # (recurrent usage), add input_output_aliases to write the result in place.


if __name__ == "__main__":
    key = jax.random.PRNGKey(0)
    k1, k2, k3, k4, k5, k6 = jax.random.split(key, 6)

    # Deterministic parameter init, same as nn.Parameter(torch.tensor(0.5)).
    mu = jnp.float32(0.5)

    # 1) Small NCHW input, matching what a conv-style caller would pass to Shift.
    x = jax.random.normal(k1, (2, 4, 16, 16), dtype=jnp.float32)
    x_prev = jax.random.normal(k2, (2, 4, 16, 16), dtype=jnp.float32)
    out = jax.block_until_ready(shift_forward(x, x_prev, mu))
    ref = mu * x + (1.0 - mu) * x_prev
    assert out.dtype == x.dtype
    assert jnp.allclose(out, ref, atol=1e-6), "mismatch vs reference (f32)"

    # 2) Larger bf16 slab that exercises the multi-block (grid > 1) path.
    xb = jax.random.normal(k3, (8, 16, 64, 128), dtype=jnp.bfloat16)
    xbp = jax.random.normal(k4, (8, 16, 64, 128), dtype=jnp.bfloat16)
    outb = jax.block_until_ready(shift_forward(xb, xbp, mu))
    refb = (mu * xb.astype(jnp.float32)
            + (1.0 - mu) * xbp.astype(jnp.float32)).astype(jnp.bfloat16)
    assert outb.dtype == xb.dtype
    assert jnp.allclose(outb.astype(jnp.float32), refb.astype(jnp.float32),
                        atol=1e-2), "mismatch vs reference (bf16)"

    # 3) Unaligned total size (exercises the pad + slice path).
    xu = jax.random.normal(k5, (2, 3, 5, 7), dtype=jnp.float32)
    xup = jax.random.normal(k6, (2, 3, 5, 7), dtype=jnp.float32)
    outu = jax.block_until_ready(shift_forward(xu, xup, mu))
    refu = mu * xu + (1.0 - mu) * xup
    assert outu.shape == xu.shape
    assert jnp.allclose(outu, refu, atol=1e-6), "mismatch vs reference (unaligned)"

    # 4) x_prev is None path.
    out_none = shift_forward(x, None, mu)
    assert jnp.array_equal(out_none, x)

    print("KERNEL_OK")
</pallas_src>

<mosaic_0001>
module attributes {stable_mosaic.version = 11 : i64} {
  func.func @_shift_kernel(%arg0: i32, %arg1: memref<1xf32, #tpu.memory_space<smem>>, %arg2: memref<16x128xf32, #tpu.memory_space<vmem>>, %arg3: memref<16x128xf32, #tpu.memory_space<vmem>>, %arg4: memref<16x128xf32, #tpu.memory_space<vmem>>) attributes {dimension_semantics = [#tpu.dimension_semantics<parallel>], iteration_bounds = array<i64: 1>, scalar_prefetch = 1 : i64, scratch_operands = 0 : i64, tpu.core_type = #tpu.core_type<tc>, window_params = [{transform_indices = @transform_0, window_bounds = array<i64: 16, 128>}, {transform_indices = @transform_1, window_bounds = array<i64: 16, 128>}, {transform_indices = @transform_2, window_bounds = array<i64: 16, 128>}]} {
    %c0 = arith.constant 0 : index
    %0 = memref.load %arg1[%c0] : memref<1xf32, #tpu.memory_space<smem>>
    %cst = arith.constant 1.000000e+00 : f32
    %1 = arith.subf %cst, %0 : f32
    %c0_0 = arith.constant 0 : index
    %c0_1 = arith.constant 0 : index
    %2 = vector.load %arg2[%c0_0, %c0_1] : memref<16x128xf32, #tpu.memory_space<vmem>>, vector<16x128xf32>
    %c0_2 = arith.constant 0 : index
    %c0_3 = arith.constant 0 : index
    %3 = vector.load %arg3[%c0_2, %c0_3] : memref<16x128xf32, #tpu.memory_space<vmem>>, vector<16x128xf32>
    %4 = vector.broadcast %0 : f32 to vector<16x128xf32>
    %5 = arith.mulf %4, %2 : vector<16x128xf32>
    %6 = vector.broadcast %1 : f32 to vector<16x128xf32>
    %7 = arith.mulf %6, %3 : vector<16x128xf32>
    %8 = arith.addf %5, %7 : vector<16x128xf32>
    %c0_4 = arith.constant 0 : index
    %c0_5 = arith.constant 0 : index
    %9 = vector.load %arg4[%c0_4, %c0_5] : memref<16x128xf32, #tpu.memory_space<vmem>>, vector<16x128xf32>
    tpu.vector_store %arg4[%c0_4, %c0_5], %8 {strides = array<i32>} : memref<16x128xf32, #tpu.memory_space<vmem>>, vector<16x128xf32>,
    return
  }
  func.func @transform_0(%arg0: i32, %arg1: memref<1xf32, #tpu.memory_space<smem>>) -> (i32, i32) {
    %c0_i32 = arith.constant 0 : i32
    %c0_i32_0 = arith.constant 0 : i32
    return %arg0, %c0_i32 : i32, i32
  }
  func.func @transform_1(%arg0: i32, %arg1: memref<1xf32, #tpu.memory_space<smem>>) -> (i32, i32) {
    %c0_i32 = arith.constant 0 : i32
    %c0_i32_0 = arith.constant 0 : i32
    return %arg0, %c0_i32 : i32, i32
  }
  func.func @transform_2(%arg0: i32, %arg1: memref<1xf32, #tpu.memory_space<smem>>) -> (i32, i32) {
    %c0_i32 = arith.constant 0 : i32
    %c0_i32_0 = arith.constant 0 : i32
    return %arg0, %c0_i32 : i32, i32
  }
}

</mosaic_0001>

<bundles_post_ra>
// kernel: tpu_custom_call.1
= control target key start
LH: loop header
LB: loop body
LE: loop exit
PB: predicated region body
PF: predicated region fallthrough
CT: control target
= control target key end

     0   :  { %9 = vsyncpa [#allocation5], 0  ;;  %s229_s0 = inlined_call_operand.<no memory space> [shape: f32[1], index: 0, kind: input, shape index: {}]   ;;  %s230_s1 = inlined_call_operand.hbm [shape: f32[16,128], index: 1, kind: input, shape index: {}]   ;;  %s231_s2 = inlined_call_operand.hbm [shape: f32[16,128], index: 2, kind: input, shape index: {}]   ;;  %s232_s3 = inlined_call_operand.hbm [shape: f32[16,128], index: 3, kind: output, shape index: {}]  }
   0x1   :  { %10 = vsyncpa [#allocation8], 0 }
   0x2   :  { %11 = vsyncpa [#allocation6], 0  ;;  %s153_s12 = smov [#allocation4]   ;;  %s81_s16 = scalar_lea.hbm %s230_s1, 256 }
   0x3   :  { %s17_s13 = sshll.u32 %s153_s12, 4  ;;  %p82_p0 = scmp.ne.s32.totalorder %s230_s1, %s81_s16  ;;  %s18_s13 = int_to_ptr.vmem [resolvable:$true] %s17_s13 }
   0x4   :  { %p85_p1 = scmp.lt.u32.totalorder %s81_s16, %s230_s1 }
   0x6   :  { %p87_p2 = pnand %p85_p1, %p82_p0 }
   0x8   :  { %90 = shalt.err (!%p87_p2)
}
   0x9   :  { %s91_s21 = scalar_lea.vmem %s18_s13, 256  ;;  %p96_p4 = scmp.lt.s32.totalorder %s18_s13, %s18_s13 }
   0xa   :  { %p92_p3 = scmp.ne.s32.totalorder %s18_s13, %s91_s21  ;;  %p97_p5 = scmp.lt.s32.totalorder %s91_s21, %s91_s21 }
   0xc   :  { %p98_p6 = por %p97_p5, %p96_p4 }
   0xe   :  { %p99_p7 = pnand %p98_p6, %p92_p3 }
  0x10   :  { %102 = shalt.err (!%p99_p7)
}
  0x11   :  { %s154_s22 = smov 128   ;;  %s155_s23 = smov 8  }
  0x12   :  { %23 = dma.hbm_to_vmem [thread:$0]  %s230_s1, 256, %s18_s13, [#allocation5], %s154_s22, %s154_s22, %s155_s23  }
  0x13   :  { %s156_s26 = smov [#allocation7]   ;;  %s103_s30 = scalar_lea.hbm %s231_s2, 256 }
  0x14   :  { %s29_s27 = sshll.u32 %s156_s26, 4  ;;  %p104_p8 = scmp.ne.s32.totalorder %s231_s2, %s103_s30  ;;  %s30_s27 = int_to_ptr.vmem [resolvable:$true] %s29_s27 }
  0x15   :  { %p107_p9 = scmp.lt.u32.totalorder %s103_s30, %s231_s2 }
  0x17   :  { %p109_p10 = pnand %p107_p9, %p104_p8 }
  0x19   :  { %112 = shalt.err (!%p109_p10)
}
  0x1a   :  { %s113_s8 = scalar_lea.vmem %s30_s27, 256  ;;  %p118_p12 = scmp.lt.s32.totalorder %s30_s27, %s30_s27 }
  0x1b   :  { %p114_p11 = scmp.ne.s32.totalorder %s30_s27, %s113_s8  ;;  %p119_p13 = scmp.lt.s32.totalorder %s113_s8, %s113_s8 }
  0x1d   :  { %p120_p0 = por %p119_p13, %p118_p12 }
  0x1f   :  { %p121_p1 = pnand %p120_p0, %p114_p11 }
  0x21   :  { %124 = shalt.err (!%p121_p1)
}
  0x22   :  { %35 = dma.hbm_to_vmem [thread:$0]  %s231_s2, 256, %s30_s27, [#allocation8], %s154_s22, %s154_s22, %s155_s23  }
  0x23   :  { %147 = dma.done.wait [#allocation5], 256  }
  0x24   :  { %148 = vsyncadd [#allocation5], 4294967040 }
  0x25   :  { %149 = dma.done.wait [#allocation8], 256  }
  0x26   :  { %150 = vsyncadd [#allocation8], 4294967040  ;;  %s43_s12 = ssub.f32 1.0, %s229_s0  ;;  %v48_v0 = vstv %s229_s0  ;;  %v44_v2 = vld [vmem:[#allocation4] sm:$0xff]  ;;  %v46_v3 = vld [vmem:[#allocation7] sm:$0xff]  ;;  %s157_s2 = smov [#allocation9]  }
  0x27   :  { %v45_v4 = vld [vmem:[#allocation4 + $0x8] sm:$0xff]  ;;  %v49_v5 = vmul.f32 %v48_v0, %v44_v2  ;;  %v47_v7 = vld [vmem:[#allocation7 + $0x8] sm:$0xff]  ;;  %s63_s15 = sshll.u32 %s157_s2, 4  ;;  %s64_s15 = int_to_ptr.vmem [resolvable:$true] %s63_s15 }
  0x28   :  { %v51_v1 = vstv %s43_s12  ;;  %v50_v8 = vmul.f32 %v48_v0, %v45_v4  ;;  %s125_s16 = scalar_lea.vmem %s64_s15, 256  ;;  %p130_p3 = scmp.lt.s32.totalorder %s64_s15, %s64_s15 }
  0x29   :  { %v52_v6 = vmul.f32 %v51_v1, %v46_v3  ;;  %v53_v9 = vmul.f32 %v51_v1, %v47_v7  ;;  %p126_p2 = scmp.ne.s32.totalorder %s64_s15, %s125_s16  ;;  %p131_p4 = scmp.lt.s32.totalorder %s125_s16, %s125_s16 }
  0x2b   :  { %v54_v10 = vadd.f32 %v52_v6, %v49_v5  ;;  %v55_v11 = vadd.f32 %v53_v9, %v50_v8  ;;  %p132_p5 = por %p131_p4, %p130_p3 }
  0x2d   :  { %56 = vst [vmem:[#allocation9] sm:$0xff] %v54_v10  ;;  %57 = vst [vmem:[#allocation9 + $0x8] sm:$0xff] %v55_v11  ;;  %p133_p6 = pnand %p132_p5, %p126_p2 }
  0x2f   :  { %136 = shalt.err (!%p133_p6)
}
  0x30   :  { %s137_s18 = scalar_lea.hbm %s232_s3, 256 }
  0x31   :  { %p138_p7 = scmp.ne.s32.totalorder %s232_s3, %s137_s18  ;;  %p141_p8 = scmp.lt.u32.totalorder %s137_s18, %s232_s3 }
  0x33   :  { %p143_p9 = pnand %p141_p8, %p138_p7 }
  0x35   :  { %146 = shalt.err (!%p143_p9)
}
  0x36   :  { %69 = dma.vmem_to_hbm [thread:$0]  %s64_s15, 256, %s232_s3, [#allocation6], %s154_s22, %s154_s22, %s155_s23  }
  0x37   :  { %151 = dma.done.wait [#allocation6], 256  }
  0x38   :  { %152 = vsyncadd [#allocation6], 4294967040 }
  0x39   :  { %73 = vsyncpa [#allocation5], 1 }
  0x3a   :  { %74 = vsyncpa [#allocation8], 1 }
  0x3b   :  { %75 = vsyncpa [#allocation6], 1 }

</bundles_post_ra>
